<compile_context>
chip_gen: v5e
topology: v5e:2x2
jax: 0.10.0
libtpu: 0.0.40
codegen_flags: <defaults>
</compile_context>

<pallas_src>
import functools

import jax
import jax.numpy as jnp
import numpy as np
from jax import lax
from jax.experimental import pallas as pl
from jax.experimental.pallas import tpu as pltpu

BN_EPS = 1e-5
# 3x3 taps, (dh, dw) row-major -> tap index t = (dh+1)*3 + (dw+1)
TAPS = tuple((dh, dw) for dh in (-1, 0, 1) for dw in (-1, 0, 1))


# ---------------------------------------------------------------------------
# Fused kernel: upsample + concat + conv1a/BN/ReLU + conv1b/BN + shortcut/BN
#               + residual add + ReLU, one sample per grid step.
# ---------------------------------------------------------------------------
def _up_block_kernel(x1_ref, x2_ref, up_ref, masks_ref,
                     w1a_ref, b1a_ref, w1b_ref, b1b_ref, wsc_ref, bsc_ref,
                     o_ref,
                     x_scr, colx_scr, colh_scr, *, H, W):
    # layout (per sample, lane-dense on H*W):
    #   x1_ref    (1, C1, H1*W1)   low-res input, planes flattened
    #   x2_ref    (1, C2, H*W)     skip connection, planes flattened
    #   up_ref    (H1*W1, H*W)     kron(A_h, A_w)^T bilinear-upsample matrix
    #   masks_ref (9, H*W)         3x3 halo validity masks (zero padding)
    #   w*_ref    (Cout, 9*Cin)    conv weights, BN scale folded, (kh,kw,c) order
    #   b*_ref    (Cout, 1)        folded BN bias (column)
    #   o_ref     (1, Cout, H*W)
    #   scratch:  x_scr (Cin,H*W), colx_scr (9*Cin,H*W), colh_scr (9*Cmid,H*W)
    HW = H * W
    c1 = x1_ref.shape[1]
    c2 = x2_ref.shape[1]
    cin = c1 + c2

    # --- bilinear 2x upsample (one MXU matmul) + channel concat, into VMEM ---
    x_scr[0:c2, :] = x2_ref[0].astype(jnp.float32)
    x_scr[c2:cin, :] = jnp.dot(x1_ref[0].astype(jnp.float32), up_ref[...],
                               preferred_element_type=jnp.float32)

    # --- im2col: 9 lane-rolled, border-masked copies stacked on sublanes -----
    def im2col(src, dst):
        c = src.shape[0]
        for t, (dh, dw) in enumerate(TAPS):
            s = dh * W + dw                       # want out[:, p] = src[:, p+s]
            shifted = pltpu.roll(src, (-s) % HW, axis=1) if s else src
            dst[t * c:(t + 1) * c, :] = shifted * masks_ref[t:t + 1, :]

    x = x_scr[...]                                # (Cin, HW)
    im2col(x, colx_scr)                           # (9*Cin, HW)
    cols_x = colx_scr[...]

    # --- conv1a (3x3) + folded BN + ReLU ---
    h1 = jnp.dot(w1a_ref[...], cols_x, preferred_element_type=jnp.float32)
    h1 = jnp.maximum(h1 + b1a_ref[...], 0.0)      # (Cmid, HW)

    # --- conv1b (3x3) + folded BN ---
    im2col(h1, colh_scr)                          # (9*Cmid, HW)
    h2 = jnp.dot(w1b_ref[...], colh_scr[...], preferred_element_type=jnp.float32)
    h2 = h2 + b1b_ref[...]

    # --- shortcut conv (3x3) + folded BN, residual add, final ReLU ---
    sc = jnp.dot(wsc_ref[...], cols_x, preferred_element_type=jnp.float32)
    out = jnp.maximum(h2 + sc + bsc_ref[...], 0.0)
    o_ref[0] = out.astype(o_ref.dtype)            # (Cout, HW) unmasked, lane-dense


# ---------------------------------------------------------------------------
# Host-side constant builders
# ---------------------------------------------------------------------------
def bilinear_matrix(n_in, n_out):
    """Interpolation matrix M (n_out, n_in), align_corners=True: y = M @ x."""
    if n_in == 1 or n_out == 1:
        m = np.zeros((n_out, n_in), np.float32)
        m[:, 0] = 1.0
        return jnp.asarray(m)
    out_idx = np.arange(n_out, dtype=np.float64)
    src = out_idx * (n_in - 1) / (n_out - 1)
    i0 = np.clip(np.floor(src).astype(np.int64), 0, n_in - 2)
    frac = (src - i0).astype(np.float32)
    m = np.zeros((n_out, n_in), np.float32)
    m[np.arange(n_out), i0] += 1.0 - frac
    m[np.arange(n_out), i0 + 1] += frac
    return jnp.asarray(m)


def halo_masks(H, W):
    """(9, H*W) f32 masks: mask[t, h*W+w] = 1 iff (h+dh, w+dw) is in bounds."""
    hh, ww = np.meshgrid(np.arange(H), np.arange(W), indexing="ij")
    hh = hh.reshape(-1)
    ww = ww.reshape(-1)
    ms = []
    for dh, dw in TAPS:
        ok = (hh + dh >= 0) & (hh + dh < H) & (ww + dw >= 0) & (ww + dw < W)
        ms.append(ok.astype(np.float32))
    return jnp.asarray(np.stack(ms, axis=0))


def fold_bn(conv_bias, gamma, beta, mean, var, eps=BN_EPS):
    scale = gamma / jnp.sqrt(var + eps)
    shift = beta - mean * scale + conv_bias * scale
    return scale, shift


def fold_conv_bn(w_oihw, conv_bias, bn):
    """Fold eval-mode BN into conv: W' (O, 9*I) in (kh,kw,c) order, bias (O,1)."""
    scale, shift = fold_bn(conv_bias, *bn)
    wf = w_oihw * scale[:, None, None, None]
    o = w_oihw.shape[0]
    w_mat = jnp.transpose(wf, (0, 2, 3, 1)).reshape(o, -1)   # (O, kh*kw*Cin)
    return w_mat, shift.reshape(o, 1)


# ---------------------------------------------------------------------------
# Up.forward wrapper (public interface NCHW, like PyTorch)
# ---------------------------------------------------------------------------
def up_forward(x1_nchw, x2_nchw, params):
    n, c1, h1, w1 = x1_nchw.shape
    _, c2, h, w = x2_nchw.shape
    assert (h, w) == (2 * h1, 2 * w1)
    in_ch = c1 + c2
    hw = h * w
    mid_ch = params["w1a"].shape[0]
    out_ch = params["w1b"].shape[0]

    # 2D bilinear upsample as a single matmul: x_flat @ kron(A_h, A_w)^T
    up_mat = jnp.kron(bilinear_matrix(h1, h), bilinear_matrix(w1, w)).T
    masks = halo_masks(h, w)

    w1a, b1a = fold_conv_bn(params["w1a"], params["b1a"], params["bn1a"])
    w1b, b1b = fold_conv_bn(params["w1b"], params["b1b"], params["bn1b"])
    wsc, bsc = fold_conv_bn(params["wsc"], params["bsc"], params["bnsc"])

    x1_flat = x1_nchw.reshape(n, c1, h1 * w1)     # contiguous -> free reshape
    x2_flat = x2_nchw.reshape(n, c2, hw)

    kern = functools.partial(_up_block_kernel, H=h, W=w)
    out = pl.pallas_call(
        kern,
        out_shape=jax.ShapeDtypeStruct((n, out_ch, hw), x1_nchw.dtype),
        grid=(n,),
        in_specs=[
            pl.BlockSpec((1, c1, h1 * w1), lambda i: (i, 0, 0)),
            pl.BlockSpec((1, c2, hw), lambda i: (i, 0, 0)),
            pl.BlockSpec((h1 * w1, hw), lambda i: (0, 0)),
            pl.BlockSpec((9, hw), lambda i: (0, 0)),
            pl.BlockSpec((mid_ch, 9 * in_ch), lambda i: (0, 0)),
            pl.BlockSpec((mid_ch, 1), lambda i: (0, 0)),
            pl.BlockSpec((out_ch, 9 * mid_ch), lambda i: (0, 0)),
            pl.BlockSpec((out_ch, 1), lambda i: (0, 0)),
            pl.BlockSpec((out_ch, 9 * in_ch), lambda i: (0, 0)),
            pl.BlockSpec((out_ch, 1), lambda i: (0, 0)),
        ],
        out_specs=pl.BlockSpec((1, out_ch, hw), lambda i: (i, 0, 0)),
        scratch_shapes=[
            pltpu.VMEM((in_ch, hw), jnp.float32),        # concat(x2, up(x1))
            pltpu.VMEM((9 * in_ch, hw), jnp.float32),    # im2col(x)
            pltpu.VMEM((9 * mid_ch, hw), jnp.float32),   # im2col(relu(conv1a))
        ],
        compiler_params=pltpu.CompilerParams(
            dimension_semantics=("parallel",)),
    )(x1_flat, x2_flat, up_mat, masks, w1a, b1a, w1b, b1b, wsc, bsc)
    return out.reshape(n, out_ch, h, w)            # NCHW (free reshape)


# ---------------------------------------------------------------------------
# Deterministic synthetic parameters
# ---------------------------------------------------------------------------
def make_params(key, in_ch, out_ch):
    mid_ch = in_ch // 2

    def conv_p(k, cout, cin):
        kw, kb = jax.random.split(k)
        w = jax.random.normal(kw, (cout, cin, 3, 3), jnp.float32) * 0.2
        b = jax.random.normal(kb, (cout,), jnp.float32) * 0.1
        return w, b

    def bn_p(k, c):
        k1, k2, k3, k4 = jax.random.split(k, 4)
        gamma = jax.random.uniform(k1, (c,), jnp.float32, 0.5, 1.5)
        beta = jax.random.normal(k2, (c,), jnp.float32) * 0.1
        mean = jax.random.normal(k3, (c,), jnp.float32) * 0.1
        var = jax.random.uniform(k4, (c,), jnp.float32, 0.5, 1.5)
        return gamma, beta, mean, var

    ks = jax.random.split(key, 6)
    p = {}
    p["w1a"], p["b1a"] = conv_p(ks[0], mid_ch, in_ch)    # conv1: in -> mid
    p["bn1a"] = bn_p(ks[1], mid_ch)
    p["w1b"], p["b1b"] = conv_p(ks[2], out_ch, mid_ch)   # conv1: mid -> out
    p["bn1b"] = bn_p(ks[3], out_ch)
    p["wsc"], p["bsc"] = conv_p(ks[4], out_ch, in_ch)    # shortcut: in -> out
    p["bnsc"] = bn_p(ks[5], out_ch)
    return p


# ---------------------------------------------------------------------------
# Pure-JAX reference (NCHW, lax.conv) for validation
# ---------------------------------------------------------------------------
def _ref_conv_bn(x, w_oihw, bias, bn, relu, residual=None):
    gamma, beta, mean, var = bn
    y = lax.conv_general_dilated(x, w_oihw, (1, 1), "SAME",
                                 dimension_numbers=("NCHW", "OIHW", "NCHW"))
    y = y + bias[None, :, None, None]
    y = (y - mean[None, :, None, None]) / jnp.sqrt(var[None, :, None, None] + BN_EPS)
    y = y * gamma[None, :, None, None] + beta[None, :, None, None]
    if residual is not None:
        y = y + residual
    if relu:
        y = jnp.maximum(y, 0.0)
    return y


def ref_forward(x1, x2, params):
    n, c1, h1, w1 = x1.shape
    a_h = bilinear_matrix(h1, 2 * h1)
    a_w = bilinear_matrix(w1, 2 * w1)
    x1_up = jnp.einsum("oi,pj,ncij->ncop", a_h, a_w, x1)
    x = jnp.concatenate([x2, x1_up], axis=1)
    h = _ref_conv_bn(x, params["w1a"], params["b1a"], params["bn1a"], relu=True)
    h = _ref_conv_bn(h, params["w1b"], params["b1b"], params["bn1b"], relu=False)
    out = _ref_conv_bn(x, params["wsc"], params["bsc"], params["bnsc"],
                       relu=True, residual=h)
    return out


# ---------------------------------------------------------------------------
if __name__ == "__main__":
    in_ch, out_ch = 4, 4          # Up(in_channels=4, out_channels=4, bilinear=True)
    N, H1, W1 = 2, 8, 8           # x1: low-res feature map (in_ch//2 channels)
    key = jax.random.PRNGKey(0)
    k1, k2, k3 = jax.random.split(key, 3)

    x1 = jax.random.normal(k1, (N, in_ch // 2, H1, W1), jnp.float32)
    x2 = jax.random.normal(k2, (N, in_ch // 2, 2 * H1, 2 * W1), jnp.float32)
    params = make_params(k3, in_ch, out_ch)

    out = jax.block_until_ready(up_forward(x1, x2, params))
    ref = jax.block_until_ready(ref_forward(x1, x2, params))
    np.testing.assert_allclose(np.asarray(out), np.asarray(ref),
                               rtol=1e-4, atol=1e-4)
    assert out.shape == (N, out_ch, 2 * H1, 2 * W1)
    print("KERNEL_OK")
</pallas_src>

<mosaic_0001>
module attributes {stable_mosaic.version = 11 : i64} {
  func.func @_up_block_kernel(%arg0: i32, %arg1: memref<1x2x64xf32, #tpu.memory_space<vmem>>, %arg2: memref<1x2x256xf32, #tpu.memory_space<vmem>>, %arg3: memref<64x256xf32, #tpu.memory_space<vmem>>, %arg4: memref<9x256xf32, #tpu.memory_space<vmem>>, %arg5: memref<2x36xf32, #tpu.memory_space<vmem>>, %arg6: memref<2x1xf32, #tpu.memory_space<vmem>>, %arg7: memref<4x18xf32, #tpu.memory_space<vmem>>, %arg8: memref<4x1xf32, #tpu.memory_space<vmem>>, %arg9: memref<4x36xf32, #tpu.memory_space<vmem>>, %arg10: memref<4x1xf32, #tpu.memory_space<vmem>>, %arg11: memref<1x4x256xf32, #tpu.memory_space<vmem>>, %arg12: memref<4x256xf32, #tpu.memory_space<vmem>>, %arg13: memref<36x256xf32, #tpu.memory_space<vmem>>, %arg14: memref<18x256xf32, #tpu.memory_space<vmem>>) attributes {dimension_semantics = [#tpu.dimension_semantics<parallel>], iteration_bounds = array<i64: 2>, scalar_prefetch = 0 : i64, scratch_operands = 3 : i64, tpu.core_type = #tpu.core_type<tc>, window_params = [{transform_indices = @transform_0, window_bounds = array<i64: 1, 2, 64>}, {transform_indices = @transform_1, window_bounds = array<i64: 1, 2, 256>}, {pipeline_mode = #tpu.pipeline_mode<synchronous>, transform_indices = @transform_2, window_bounds = array<i64: 64, 256>}, {pipeline_mode = #tpu.pipeline_mode<synchronous>, transform_indices = @transform_3, window_bounds = array<i64: 9, 256>}, {pipeline_mode = #tpu.pipeline_mode<synchronous>, transform_indices = @transform_4, window_bounds = array<i64: 2, 36>}, {pipeline_mode = #tpu.pipeline_mode<synchronous>, transform_indices = @transform_5, window_bounds = array<i64: 2, 1>}, {pipeline_mode = #tpu.pipeline_mode<synchronous>, transform_indices = @transform_6, window_bounds = array<i64: 4, 18>}, {pipeline_mode = #tpu.pipeline_mode<synchronous>, transform_indices = @transform_7, window_bounds = array<i64: 4, 1>}, {pipeline_mode = #tpu.pipeline_mode<synchronous>, transform_indices = @transform_8, window_bounds = array<i64: 4, 36>}, {pipeline_mode = #tpu.pipeline_mode<synchronous>, transform_indices = @transform_9, window_bounds = array<i64: 4, 1>}, {transform_indices = @transform_10, window_bounds = array<i64: 1, 4, 256>}]} {
    %c0 = arith.constant 0 : index
    %c0_0 = arith.constant 0 : index
    %c0_1 = arith.constant 0 : index
    %0 = vector.load %arg2[%c0, %c0_0, %c0_1] : memref<1x2x256xf32, #tpu.memory_space<vmem>>, vector<1x2x256xf32>
    %1 = vector.shape_cast %0 : vector<1x2x256xf32> to vector<2x256xf32>
    %c0_2 = arith.constant 0 : index
    %c0_3 = arith.constant 0 : index
    %2 = vector.load %arg12[%c0_2, %c0_3] : memref<4x256xf32, #tpu.memory_space<vmem>>, vector<2x256xf32>
    tpu.vector_store %arg12[%c0_2, %c0_3], %1 {strides = array<i32>} : memref<4x256xf32, #tpu.memory_space<vmem>>, vector<2x256xf32>,
    %c0_4 = arith.constant 0 : index
    %c0_5 = arith.constant 0 : index
    %c0_6 = arith.constant 0 : index
    %3 = vector.load %arg1[%c0_4, %c0_5, %c0_6] : memref<1x2x64xf32, #tpu.memory_space<vmem>>, vector<1x2x64xf32>
    %4 = vector.shape_cast %3 : vector<1x2x64xf32> to vector<2x64xf32>
    %c0_7 = arith.constant 0 : index
    %c0_8 = arith.constant 0 : index
    %5 = vector.load %arg3[%c0_7, %c0_8] : memref<64x256xf32, #tpu.memory_space<vmem>>, vector<64x256xf32>
    %cst = arith.constant dense<0.000000e+00> : vector<2x256xf32>
    %6 = tpu.matmul %4, %5, %cst {dimension_numbers = #tpu.dot_dimension_numbers<[1], [0], [0], [1], [0, 0, 1, 1], [], []>} : vector<2x64xf32>, vector<64x256xf32>, vector<2x256xf32> -> vector<2x256xf32>
    %c2 = arith.constant 2 : index
    %c0_9 = arith.constant 0 : index
    %7 = vector.load %arg12[%c2, %c0_9] : memref<4x256xf32, #tpu.memory_space<vmem>>, vector<2x256xf32>
    tpu.vector_store %arg12[%c2, %c0_9], %6 {strides = array<i32>} : memref<4x256xf32, #tpu.memory_space<vmem>>, vector<2x256xf32>,
    %c0_10 = arith.constant 0 : index
    %c0_11 = arith.constant 0 : index
    %8 = vector.load %arg12[%c0_10, %c0_11] : memref<4x256xf32, #tpu.memory_space<vmem>>, vector<4x256xf32>
    %c17_i32 = arith.constant 17 : i32
    %9 = tpu.dynamic_rotate %8 by %c17_i32 dim 1 : vector<4x256xf32>, i32 -> vector<4x256xf32>
    %c0_12 = arith.constant 0 : index
    %c0_13 = arith.constant 0 : index
    %10 = vector.load %arg4[%c0_12, %c0_13] : memref<9x256xf32, #tpu.memory_space<vmem>>, vector<1x256xf32>
    %11 = vector.broadcast %10 : vector<1x256xf32> to vector<4x256xf32>
    %12 = arith.mulf %9, %11 : vector<4x256xf32>
    %c0_14 = arith.constant 0 : index
    %c0_15 = arith.constant 0 : index
    %13 = vector.load %arg13[%c0_14, %c0_15] : memref<36x256xf32, #tpu.memory_space<vmem>>, vector<4x256xf32>
    tpu.vector_store %arg13[%c0_14, %c0_15], %12 {strides = array<i32>} : memref<36x256xf32, #tpu.memory_space<vmem>>, vector<4x256xf32>,
    %c16_i32 = arith.constant 16 : i32
    %14 = tpu.dynamic_rotate %8 by %c16_i32 dim 1 : vector<4x256xf32>, i32 -> vector<4x256xf32>
    %c1 = arith.constant 1 : index
    %c0_16 = arith.constant 0 : index
    %15 = vector.load %arg4[%c1, %c0_16] : memref<9x256xf32, #tpu.memory_space<vmem>>, vector<1x256xf32>
    %16 = vector.broadcast %15 : vector<1x256xf32> to vector<4x256xf32>
    %17 = arith.mulf %14, %16 : vector<4x256xf32>
    %c4 = arith.constant 4 : index
    %c0_17 = arith.constant 0 : index
    %18 = vector.load %arg13[%c4, %c0_17] : memref<36x256xf32, #tpu.memory_space<vmem>>, vector<4x256xf32>
    tpu.vector_store %arg13[%c4, %c0_17], %17 {strides = array<i32>} : memref<36x256xf32, #tpu.memory_space<vmem>>, vector<4x256xf32>,
    %c15_i32 = arith.constant 15 : i32
    %19 = tpu.dynamic_rotate %8 by %c15_i32 dim 1 : vector<4x256xf32>, i32 -> vector<4x256xf32>
    %c2_18 = arith.constant 2 : index
    %c0_19 = arith.constant 0 : index
    %20 = vector.load %arg4[%c2_18, %c0_19] : memref<9x256xf32, #tpu.memory_space<vmem>>, vector<1x256xf32>
    %21 = vector.broadcast %20 : vector<1x256xf32> to vector<4x256xf32>
    %22 = arith.mulf %19, %21 : vector<4x256xf32>
    %c8 = arith.constant 8 : index
    %c0_20 = arith.constant 0 : index
    %23 = vector.load %arg13[%c8, %c0_20] : memref<36x256xf32, #tpu.memory_space<vmem>>, vector<4x256xf32>
    tpu.vector_store %arg13[%c8, %c0_20], %22 {strides = array<i32>} : memref<36x256xf32, #tpu.memory_space<vmem>>, vector<4x256xf32>,
    %c1_i32 = arith.constant 1 : i32
    %24 = tpu.dynamic_rotate %8 by %c1_i32 dim 1 : vector<4x256xf32>, i32 -> vector<4x256xf32>
    %c3 = arith.constant 3 : index
    %c0_21 = arith.constant 0 : index
    %25 = vector.load %arg4[%c3, %c0_21] : memref<9x256xf32, #tpu.memory_space<vmem>>, vector<1x256xf32>
    %26 = vector.broadcast %25 : vector<1x256xf32> to vector<4x256xf32>
    %27 = arith.mulf %24, %26 : vector<4x256xf32>
    %c12 = arith.constant 12 : index
    %c0_22 = arith.constant 0 : index
    %28 = vector.load %arg13[%c12, %c0_22] : memref<36x256xf32, #tpu.memory_space<vmem>>, vector<4x256xf32>
    tpu.vector_store %arg13[%c12, %c0_22], %27 {strides = array<i32>} : memref<36x256xf32, #tpu.memory_space<vmem>>, vector<4x256xf32>,
    %c4_23 = arith.constant 4 : index
    %c0_24 = arith.constant 0 : index
    %29 = vector.load %arg4[%c4_23, %c0_24] : memref<9x256xf32, #tpu.memory_space<vmem>>, vector<1x256xf32>
    %30 = vector.broadcast %29 : vector<1x256xf32> to vector<4x256xf32>
    %31 = arith.mulf %8, %30 : vector<4x256xf32>
    %c16 = arith.constant 16 : index
    %c0_25 = arith.constant 0 : index
    %32 = vector.load %arg13[%c16, %c0_25] : memref<36x256xf32, #tpu.memory_space<vmem>>, vector<4x256xf32>
    tpu.vector_store %arg13[%c16, %c0_25], %31 {strides = array<i32>} : memref<36x256xf32, #tpu.memory_space<vmem>>, vector<4x256xf32>,
    %c255_i32 = arith.constant 255 : i32
    %33 = tpu.dynamic_rotate %8 by %c255_i32 dim 1 : vector<4x256xf32>, i32 -> vector<4x256xf32>
    %c5 = arith.constant 5 : index
    %c0_26 = arith.constant 0 : index
    %34 = vector.load %arg4[%c5, %c0_26] : memref<9x256xf32, #tpu.memory_space<vmem>>, vector<1x256xf32>
    %35 = vector.broadcast %34 : vector<1x256xf32> to vector<4x256xf32>
    %36 = arith.mulf %33, %35 : vector<4x256xf32>
    %c20 = arith.constant 20 : index
    %c0_27 = arith.constant 0 : index
    %37 = vector.load %arg13[%c20, %c0_27] : memref<36x256xf32, #tpu.memory_space<vmem>>, vector<4x256xf32>
    tpu.vector_store %arg13[%c20, %c0_27], %36 {strides = array<i32>} : memref<36x256xf32, #tpu.memory_space<vmem>>, vector<4x256xf32>,
    %c241_i32 = arith.constant 241 : i32
    %38 = tpu.dynamic_rotate %8 by %c241_i32 dim 1 : vector<4x256xf32>, i32 -> vector<4x256xf32>
    %c6 = arith.constant 6 : index
    %c0_28 = arith.constant 0 : index
    %39 = vector.load %arg4[%c6, %c0_28] : memref<9x256xf32, #tpu.memory_space<vmem>>, vector<1x256xf32>
    %40 = vector.broadcast %39 : vector<1x256xf32> to vector<4x256xf32>
    %41 = arith.mulf %38, %40 : vector<4x256xf32>
    %c24 = arith.constant 24 : index
    %c0_29 = arith.constant 0 : index
    %42 = vector.load %arg13[%c24, %c0_29] : memref<36x256xf32, #tpu.memory_space<vmem>>, vector<4x256xf32>
    tpu.vector_store %arg13[%c24, %c0_29], %41 {strides = array<i32>} : memref<36x256xf32, #tpu.memory_space<vmem>>, vector<4x256xf32>,
    %c240_i32 = arith.constant 240 : i32
    %43 = tpu.dynamic_rotate %8 by %c240_i32 dim 1 : vector<4x256xf32>, i32 -> vector<4x256xf32>
    %c7 = arith.constant 7 : index
    %c0_30 = arith.constant 0 : index
    %44 = vector.load %arg4[%c7, %c0_30] : memref<9x256xf32, #tpu.memory_space<vmem>>, vector<1x256xf32>
    %45 = vector.broadcast %44 : vector<1x256xf32> to vector<4x256xf32>
    %46 = arith.mulf %43, %45 : vector<4x256xf32>
    %c28 = arith.constant 28 : index
    %c0_31 = arith.constant 0 : index
    %47 = vector.load %arg13[%c28, %c0_31] : memref<36x256xf32, #tpu.memory_space<vmem>>, vector<4x256xf32>
    tpu.vector_store %arg13[%c28, %c0_31], %46 {strides = array<i32>} : memref<36x256xf32, #tpu.memory_space<vmem>>, vector<4x256xf32>,
    %c239_i32 = arith.constant 239 : i32
    %48 = tpu.dynamic_rotate %8 by %c239_i32 dim 1 : vector<4x256xf32>, i32 -> vector<4x256xf32>
    %c8_32 = arith.constant 8 : index
    %c0_33 = arith.constant 0 : index
    %49 = vector.load %arg4[%c8_32, %c0_33] : memref<9x256xf32, #tpu.memory_space<vmem>>, vector<1x256xf32>
    %50 = vector.broadcast %49 : vector<1x256xf32> to vector<4x256xf32>
    %51 = arith.mulf %48, %50 : vector<4x256xf32>
    %c32 = arith.constant 32 : index
    %c0_34 = arith.constant 0 : index
    %52 = vector.load %arg13[%c32, %c0_34] : memref<36x256xf32, #tpu.memory_space<vmem>>, vector<4x256xf32>
    tpu.vector_store %arg13[%c32, %c0_34], %51 {strides = array<i32>} : memref<36x256xf32, #tpu.memory_space<vmem>>, vector<4x256xf32>,
    %c0_35 = arith.constant 0 : index
    %c0_36 = arith.constant 0 : index
    %53 = vector.load %arg13[%c0_35, %c0_36] : memref<36x256xf32, #tpu.memory_space<vmem>>, vector<36x256xf32>
    %c0_37 = arith.constant 0 : index
    %c0_38 = arith.constant 0 : index
    %54 = vector.load %arg5[%c0_37, %c0_38] : memref<2x36xf32, #tpu.memory_space<vmem>>, vector<2x36xf32>
    %cst_39 = arith.constant dense<0.000000e+00> : vector<2x256xf32>
    %55 = tpu.matmul %54, %53, %cst_39 {dimension_numbers = #tpu.dot_dimension_numbers<[1], [0], [0], [1], [0, 0, 1, 1], [], []>} : vector<2x36xf32>, vector<36x256xf32>, vector<2x256xf32> -> vector<2x256xf32>
    %c0_40 = arith.constant 0 : index
    %c0_41 = arith.constant 0 : index
    %56 = vector.load %arg6[%c0_40, %c0_41] : memref<2x1xf32, #tpu.memory_space<vmem>>, vector<2x1xf32>
    %57 = vector.broadcast %56 : vector<2x1xf32> to vector<2x256xf32>
    %58 = arith.addf %55, %57 : vector<2x256xf32>
    %cst_42 = arith.constant 0.000000e+00 : f32
    %59 = vector.broadcast %cst_42 : f32 to vector<2x256xf32>
    %60 = arith.maximumf %58, %59 : vector<2x256xf32>
    %c17_i32_43 = arith.constant 17 : i32
    %61 = tpu.dynamic_rotate %60 by %c17_i32_43 dim 1 : vector<2x256xf32>, i32 -> vector<2x256xf32>
    %c0_44 = arith.constant 0 : index
    %c0_45 = arith.constant 0 : index
    %62 = vector.load %arg4[%c0_44, %c0_45] : memref<9x256xf32, #tpu.memory_space<vmem>>, vector<1x256xf32>
    %63 = vector.broadcast %62 : vector<1x256xf32> to vector<2x256xf32>
    %64 = arith.mulf %61, %63 : vector<2x256xf32>
    %c0_46 = arith.constant 0 : index
    %c0_47 = arith.constant 0 : index
    %65 = vector.load %arg14[%c0_46, %c0_47] : memref<18x256xf32, #tpu.memory_space<vmem>>, vector<2x256xf32>
    tpu.vector_store %arg14[%c0_46, %c0_47], %64 {strides = array<i32>} : memref<18x256xf32, #tpu.memory_space<vmem>>, vector<2x256xf32>,
    %c16_i32_48 = arith.constant 16 : i32
    %66 = tpu.dynamic_rotate %60 by %c16_i32_48 dim 1 : vector<2x256xf32>, i32 -> vector<2x256xf32>
    %c1_49 = arith.constant 1 : index
    %c0_50 = arith.constant 0 : index
    %67 = vector.load %arg4[%c1_49, %c0_50] : memref<9x256xf32, #tpu.memory_space<vmem>>, vector<1x256xf32>
    %68 = vector.broadcast %67 : vector<1x256xf32> to vector<2x256xf32>
    %69 = arith.mulf %66, %68 : vector<2x256xf32>
    %c2_51 = arith.constant 2 : index
    %c0_52 = arith.constant 0 : index
    %70 = vector.load %arg14[%c2_51, %c0_52] : memref<18x256xf32, #tpu.memory_space<vmem>>, vector<2x256xf32>
    tpu.vector_store %arg14[%c2_51, %c0_52], %69 {strides = array<i32>} : memref<18x256xf32, #tpu.memory_space<vmem>>, vector<2x256xf32>,
    %c15_i32_53 = arith.constant 15 : i32
    %71 = tpu.dynamic_rotate %60 by %c15_i32_53 dim 1 : vector<2x256xf32>, i32 -> vector<2x256xf32>
    %c2_54 = arith.constant 2 : index
    %c0_55 = arith.constant 0 : index
    %72 = vector.load %arg4[%c2_54, %c0_55] : memref<9x256xf32, #tpu.memory_space<vmem>>, vector<1x256xf32>
    %73 = vector.broadcast %72 : vector<1x256xf32> to vector<2x256xf32>
    %74 = arith.mulf %71, %73 : vector<2x256xf32>
    %c4_56 = arith.constant 4 : index
    %c0_57 = arith.constant 0 : index
    %75 = vector.load %arg14[%c4_56, %c0_57] : memref<18x256xf32, #tpu.memory_space<vmem>>, vector<2x256xf32>
    tpu.vector_store %arg14[%c4_56, %c0_57], %74 {strides = array<i32>} : memref<18x256xf32, #tpu.memory_space<vmem>>, vector<2x256xf32>,
    %c1_i32_58 = arith.constant 1 : i32
    %76 = tpu.dynamic_rotate %60 by %c1_i32_58 dim 1 : vector<2x256xf32>, i32 -> vector<2x256xf32>
    %c3_59 = arith.constant 3 : index
    %c0_60 = arith.constant 0 : index
    %77 = vector.load %arg4[%c3_59, %c0_60] : memref<9x256xf32, #tpu.memory_space<vmem>>, vector<1x256xf32>
    %78 = vector.broadcast %77 : vector<1x256xf32> to vector<2x256xf32>
    %79 = arith.mulf %76, %78 : vector<2x256xf32>
    %c6_61 = arith.constant 6 : index
    %c0_62 = arith.constant 0 : index
    %80 = vector.load %arg14[%c6_61, %c0_62] : memref<18x256xf32, #tpu.memory_space<vmem>>, vector<2x256xf32>
    tpu.vector_store %arg14[%c6_61, %c0_62], %79 {strides = array<i32>} : memref<18x256xf32, #tpu.memory_space<vmem>>, vector<2x256xf32>,
    %c4_63 = arith.constant 4 : index
    %c0_64 = arith.constant 0 : index
    %81 = vector.load %arg4[%c4_63, %c0_64] : memref<9x256xf32, #tpu.memory_space<vmem>>, vector<1x256xf32>
    %82 = vector.broadcast %81 : vector<1x256xf32> to vector<2x256xf32>
    %83 = arith.mulf %60, %82 : vector<2x256xf32>
    %c8_65 = arith.constant 8 : index
    %c0_66 = arith.constant 0 : index
    %84 = vector.load %arg14[%c8_65, %c0_66] : memref<18x256xf32, #tpu.memory_space<vmem>>, vector<2x256xf32>
    tpu.vector_store %arg14[%c8_65, %c0_66], %83 {strides = array<i32>} : memref<18x256xf32, #tpu.memory_space<vmem>>, vector<2x256xf32>,
    %c255_i32_67 = arith.constant 255 : i32
    %85 = tpu.dynamic_rotate %60 by %c255_i32_67 dim 1 : vector<2x256xf32>, i32 -> vector<2x256xf32>
    %c5_68 = arith.constant 5 : index
    %c0_69 = arith.constant 0 : index
    %86 = vector.load %arg4[%c5_68, %c0_69] : memref<9x256xf32, #tpu.memory_space<vmem>>, vector<1x256xf32>
    %87 = vector.broadcast %86 : vector<1x256xf32> to vector<2x256xf32>
    %88 = arith.mulf %85, %87 : vector<2x256xf32>
    %c10 = arith.constant 10 : index
    %c0_70 = arith.constant 0 : index
    %89 = vector.load %arg14[%c10, %c0_70] : memref<18x256xf32, #tpu.memory_space<vmem>>, vector<2x256xf32>
    tpu.vector_store %arg14[%c10, %c0_70], %88 {strides = array<i32>} : memref<18x256xf32, #tpu.memory_space<vmem>>, vector<2x256xf32>,
    %c241_i32_71 = arith.constant 241 : i32
    %90 = tpu.dynamic_rotate %60 by %c241_i32_71 dim 1 : vector<2x256xf32>, i32 -> vector<2x256xf32>
    %c6_72 = arith.constant 6 : index
    %c0_73 = arith.constant 0 : index
    %91 = vector.load %arg4[%c6_72, %c0_73] : memref<9x256xf32, #tpu.memory_space<vmem>>, vector<1x256xf32>
    %92 = vector.broadcast %91 : vector<1x256xf32> to vector<2x256xf32>
    %93 = arith.mulf %90, %92 : vector<2x256xf32>
    %c12_74 = arith.constant 12 : index
    %c0_75 = arith.constant 0 : index
    %94 = vector.load %arg14[%c12_74, %c0_75] : memref<18x256xf32, #tpu.memory_space<vmem>>, vector<2x256xf32>
    tpu.vector_store %arg14[%c12_74, %c0_75], %93 {strides = array<i32>} : memref<18x256xf32, #tpu.memory_space<vmem>>, vector<2x256xf32>,
    %c240_i32_76 = arith.constant 240 : i32
    %95 = tpu.dynamic_rotate %60 by %c240_i32_76 dim 1 : vector<2x256xf32>, i32 -> vector<2x256xf32>
    %c7_77 = arith.constant 7 : index
    %c0_78 = arith.constant 0 : index
    %96 = vector.load %arg4[%c7_77, %c0_78] : memref<9x256xf32, #tpu.memory_space<vmem>>, vector<1x256xf32>
    %97 = vector.broadcast %96 : vector<1x256xf32> to vector<2x256xf32>
    %98 = arith.mulf %95, %97 : vector<2x256xf32>
    %c14 = arith.constant 14 : index
    %c0_79 = arith.constant 0 : index
    %99 = vector.load %arg14[%c14, %c0_79] : memref<18x256xf32, #tpu.memory_space<vmem>>, vector<2x256xf32>
    tpu.vector_store %arg14[%c14, %c0_79], %98 {strides = array<i32>} : memref<18x256xf32, #tpu.memory_space<vmem>>, vector<2x256xf32>,
    %c239_i32_80 = arith.constant 239 : i32
    %100 = tpu.dynamic_rotate %60 by %c239_i32_80 dim 1 : vector<2x256xf32>, i32 -> vector<2x256xf32>
    %c8_81 = arith.constant 8 : index
    %c0_82 = arith.constant 0 : index
    %101 = vector.load %arg4[%c8_81, %c0_82] : memref<9x256xf32, #tpu.memory_space<vmem>>, vector<1x256xf32>
    %102 = vector.broadcast %101 : vector<1x256xf32> to vector<2x256xf32>
    %103 = arith.mulf %100, %102 : vector<2x256xf32>
    %c16_83 = arith.constant 16 : index
    %c0_84 = arith.constant 0 : index
    %104 = vector.load %arg14[%c16_83, %c0_84] : memref<18x256xf32, #tpu.memory_space<vmem>>, vector<2x256xf32>
    tpu.vector_store %arg14[%c16_83, %c0_84], %103 {strides = array<i32>} : memref<18x256xf32, #tpu.memory_space<vmem>>, vector<2x256xf32>,
    %c0_85 = arith.constant 0 : index
    %c0_86 = arith.constant 0 : index
    %105 = vector.load %arg7[%c0_85, %c0_86] : memref<4x18xf32, #tpu.memory_space<vmem>>, vector<4x18xf32>
    %c0_87 = arith.constant 0 : index
    %c0_88 = arith.constant 0 : index
    %106 = vector.load %arg14[%c0_87, %c0_88] : memref<18x256xf32, #tpu.memory_space<vmem>>, vector<18x256xf32>
    %cst_89 = arith.constant dense<0.000000e+00> : vector<4x256xf32>
    %107 = tpu.matmul %105, %106, %cst_89 {dimension_numbers = #tpu.dot_dimension_numbers<[1], [0], [0], [1], [0, 0, 1, 1], [], []>} : vector<4x18xf32>, vector<18x256xf32>, vector<4x256xf32> -> vector<4x256xf32>
    %c0_90 = arith.constant 0 : index
    %c0_91 = arith.constant 0 : index
    %108 = vector.load %arg8[%c0_90, %c0_91] : memref<4x1xf32, #tpu.memory_space<vmem>>, vector<4x1xf32>
    %109 = vector.broadcast %108 : vector<4x1xf32> to vector<4x256xf32>
    %110 = arith.addf %107, %109 : vector<4x256xf32>
    %c0_92 = arith.constant 0 : index
    %c0_93 = arith.constant 0 : index
    %111 = vector.load %arg9[%c0_92, %c0_93] : memref<4x36xf32, #tpu.memory_space<vmem>>, vector<4x36xf32>
    %cst_94 = arith.constant dense<0.000000e+00> : vector<4x256xf32>
    %112 = tpu.matmul %111, %53, %cst_94 {dimension_numbers = #tpu.dot_dimension_numbers<[1], [0], [0], [1], [0, 0, 1, 1], [], []>} : vector<4x36xf32>, vector<36x256xf32>, vector<4x256xf32> -> vector<4x256xf32>
    %113 = arith.addf %110, %112 : vector<4x256xf32>
    %c0_95 = arith.constant 0 : index
    %c0_96 = arith.constant 0 : index
    %114 = vector.load %arg10[%c0_95, %c0_96] : memref<4x1xf32, #tpu.memory_space<vmem>>, vector<4x1xf32>
    %115 = vector.broadcast %114 : vector<4x1xf32> to vector<4x256xf32>
    %116 = arith.addf %113, %115 : vector<4x256xf32>
    %cst_97 = arith.constant 0.000000e+00 : f32
    %117 = vector.broadcast %cst_97 : f32 to vector<4x256xf32>
    %118 = arith.maximumf %116, %117 : vector<4x256xf32>
    %c0_98 = arith.constant 0 : index
    %c0_99 = arith.constant 0 : index
    %c0_100 = arith.constant 0 : index
    %119 = vector.load %arg11[%c0_98, %c0_99, %c0_100] : memref<1x4x256xf32, #tpu.memory_space<vmem>>, vector<1x4x256xf32>
    %120 = vector.shape_cast %119 : vector<1x4x256xf32> to vector<4x256xf32>
    %121 = vector.shape_cast %118 : vector<4x256xf32> to vector<1x4x256xf32>
    tpu.vector_store %arg11[%c0_98, %c0_99, %c0_100], %121 {strides = array<i32>} : memref<1x4x256xf32, #tpu.memory_space<vmem>>, vector<1x4x256xf32>,
    return
  }
  func.func @transform_0(%arg0: i32) -> (i32, i32, i32) {
    %c0_i32 = arith.constant 0 : i32
    %c0_i32_0 = arith.constant 0 : i32
    %c0_i32_1 = arith.constant 0 : i32
    return %arg0, %c0_i32, %c0_i32_0 : i32, i32, i32
  }
  func.func @transform_1(%arg0: i32) -> (i32, i32, i32) {
    %c0_i32 = arith.constant 0 : i32
    %c0_i32_0 = arith.constant 0 : i32
    %c0_i32_1 = arith.constant 0 : i32
    return %arg0, %c0_i32, %c0_i32_0 : i32, i32, i32
  }
  func.func @transform_2(%arg0: i32) -> (i32, i32) {
    %c0_i32 = arith.constant 0 : i32
    %c0_i32_0 = arith.constant 0 : i32
    %c0_i32_1 = arith.constant 0 : i32
    return %c0_i32, %c0_i32_0 : i32, i32
  }
  func.func @transform_3(%arg0: i32) -> (i32, i32) {
    %c0_i32 = arith.constant 0 : i32
    %c0_i32_0 = arith.constant 0 : i32
    %c0_i32_1 = arith.constant 0 : i32
    return %c0_i32, %c0_i32_0 : i32, i32
  }
  func.func @transform_4(%arg0: i32) -> (i32, i32) {
    %c0_i32 = arith.constant 0 : i32
    %c0_i32_0 = arith.constant 0 : i32
    %c0_i32_1 = arith.constant 0 : i32
    return %c0_i32, %c0_i32_0 : i32, i32
  }
  func.func @transform_5(%arg0: i32) -> (i32, i32) {
    %c0_i32 = arith.constant 0 : i32
    %c0_i32_0 = arith.constant 0 : i32
    %c0_i32_1 = arith.constant 0 : i32
    return %c0_i32, %c0_i32_0 : i32, i32
  }
  func.func @transform_6(%arg0: i32) -> (i32, i32) {
    %c0_i32 = arith.constant 0 : i32
    %c0_i32_0 = arith.constant 0 : i32
    %c0_i32_1 = arith.constant 0 : i32
    return %c0_i32, %c0_i32_0 : i32, i32
  }
  func.func @transform_7(%arg0: i32) -> (i32, i32) {
    %c0_i32 = arith.constant 0 : i32
    %c0_i32_0 = arith.constant 0 : i32
    %c0_i32_1 = arith.constant 0 : i32
    return %c0_i32, %c0_i32_0 : i32, i32
  }
  func.func @transform_8(%arg0: i32) -> (i32, i32) {
    %c0_i32 = arith.constant 0 : i32
    %c0_i32_0 = arith.constant 0 : i32
    %c0_i32_1 = arith.constant 0 : i32
    return %c0_i32, %c0_i32_0 : i32, i32
  }
  func.func @transform_9(%arg0: i32) -> (i32, i32) {
    %c0_i32 = arith.constant 0 : i32
    %c0_i32_0 = arith.constant 0 : i32
    %c0_i32_1 = arith.constant 0 : i32
    return %c0_i32, %c0_i32_0 : i32, i32
  }
  func.func @transform_10(%arg0: i32) -> (i32, i32, i32) {
    %c0_i32 = arith.constant 0 : i32
    %c0_i32_0 = arith.constant 0 : i32
    %c0_i32_1 = arith.constant 0 : i32
    return %arg0, %c0_i32, %c0_i32_0 : i32, i32, i32
  }
}

</mosaic_0001>

<bundles_post_ra>
// kernel: tpu_custom_call.1
= control target key start
LH: loop header
LB: loop body
LE: loop exit
PB: predicated region body
PF: predicated region fallthrough
CT: control target
= control target key end

     0   :  { %s1938_s0 = inlined_call_operand.hbm [shape: f32[2,2,64], index: 0, kind: input, shape index: {}]   ;;  %s1939_s1 = inlined_call_operand.vmem [shape: f32[2,2,256], index: 1, kind: input, shape index: {}]   ;;  %s1940_s2 = inlined_call_operand.hbm [shape: f32[64,256], index: 2, kind: input, shape index: {}]   ;;  %s1941_s3 = inlined_call_operand.hbm [shape: f32[9,256], index: 3, kind: input, shape index: {}]   ;;  %s1942_s4 = inlined_call_operand.vmem [shape: f32[2,36], index: 4, kind: input, shape index: {}]   ;;  %s1943_s5 = inlined_call_operand.vmem [shape: f32[2,1], index: 5, kind: input, shape index: {}]   ;;  %s1944_s6 = inlined_call_operand.vmem [shape: f32[4,18], index: 6, kind: input, shape index: {}]   ;;  %s1945_s7 = inlined_call_operand.vmem [shape: f32[4,1], index: 7, kind: input, shape index: {}]   ;;  %s1946_s8 = inlined_call_operand.hbm [shape: f32[4,36], index: 8, kind: input, shape index: {}]   ;;  %s1947_s9 = inlined_call_operand.vmem [shape: f32[4,1], index: 9, kind: input, shape index: {}]   ;;  %s1948_s10 = inlined_call_operand.hbm [shape: f32[2,4,256], index: 10, kind: output, shape index: {}]  }
   0x1   :  { %1949 = sst [smem:[#allocation19_spill]] %s1940_s2 }
   0x2   :  { %1950 = sst [smem:[#allocation20_spill]] %s1941_s3 }
   0x3   :  { %1951 = sst [smem:[#allocation21_spill]] %s1946_s8 }
   0x4   :  { %15 = vsyncpa [#allocation6], 0 }
   0x5   :  { %17 = vsyncpa [#allocation6 + $0x1], 0 }
   0x6   :  { %18 = vsyncpa [#allocation9], 0 }
   0x7   :  { %19 = vsyncpa [#allocation12], 0 }
   0x8   :  { %20 = vsyncpa [#allocation7], 0 }
   0x9   :  { %22 = vsyncpa [#allocation7 + $0x1], 0  ;;  %s1637_s13 = smov 0   ;;  %s1639_s14 = smov 0  }
   0xa   :  { %s1641_s15 = smov 0   ;;  %s1643_s16 = smov 0  }
   0xb LB: > { %s1952_s2 = sld [smem:[#allocation19_spill]]  ;;  %s1661_s20 = sadd.s32 4294967295, %s1566_s16   ;;  %s1566_s16 = sphi %s1643_s16, %s1967_s16   ;;  %s1562_s15 = sphi %s1641_s15, %s1966_s15   ;;  %s1558_s14 = sphi %s1639_s14, %s1965_s14   ;;  %s1554_s13 = sphi %s1637_s13, %s1964_s13  }
   0xc   : > { %p1246_p0 = scmp.ge.s32.totalorder %s1566_s16, 1  ;;  %p49_p1 = scmp.eq.s32.totalorder %s1661_s20, 0 }
   0xd   : > { %p279_p2 = scmp.lt.s32.totalorder %s1566_s16, 3  ;;  %s1568_s22 = smov [#allocation8]  }
   0xe   : > { %s292_s23 = sshll.u32 %s1568_s22, 4  ;;  %s1954_s3 = sld [smem:[#allocation20_spill]]  ;;  %s293_s23 = int_to_ptr.vmem [resolvable:$true] %s292_s23 }
   0xf   : > { %p1666_p3 = pnand %p1246_p0, %p279_p2  ;;  %s1956_s8 = sld [smem:[#allocation21_spill]] }
  0x10   : > { %s1569_s11 = smov [#allocation10]   ;;  %s1570_s17 = smov 256  }
  0x11   : > { %s290_s19 = sshll.u32 %s1952_s2, 4  ;;  %p1298_p4 = pneg %p1666_p3  ;;  %s291_s19 = int_to_ptr.hbm [resolvable:$true] %s290_s19 }
  0x12   : > { %s306_s12 = sshll.u32 %s1569_s11, 4  ;;  %s1571_s18 = smov 16   ;;  %s307_s12 = int_to_ptr.vmem [resolvable:$true] %s306_s12 }
  0x13   : > { %p1678_p6 = pnand %p1298_p4, %p49_p1  ;;  %s1572_s22 = smov [#allocation11]  }
  0x14   : > { %s304_s26 = sshll.u32 %s1954_s3, 4  ;;  %s333_s24 = sshll.u32 %s1572_s22, 4  ;;  %s305_s26 = int_to_ptr.hbm [resolvable:$true] %s304_s26  ;;  %s334_s24 = int_to_ptr.vmem [resolvable:$true] %s333_s24 }
  0x15   : > { %s331_s30 = sshll.u32 %s1956_s8, 4  ;;  %s1245_s25 = sadd.s32 4294967294, %s1566_s16   ;;  %s332_s30 = int_to_ptr.hbm [resolvable:$true] %s331_s30 }
  0x16   : > { %1301 = dma.hbm_to_vmem [thread:$0]  (!%p1678_p6), %s291_s19, 2048, %s293_s23, [#allocation9], %s1570_s17, %s1570_s17, %s1571_s18  }
  0x17   : > { %1304 = dma.hbm_to_vmem [thread:$0]  (!%p1678_p6), %s305_s26, 512, %s307_s12, [#allocation9], %s1570_s17, %s1570_s17, %s1571_s18  }
  0x18   : > { %1307 = dma.hbm_to_vmem [thread:$0]  (!%p1678_p6), %s332_s30, 64, %s334_s24, [#allocation12]  }
  0x19   : > { %s1693_s28 = sadd.s32 1, %s1566_s16   ;;  %s35_s29 = sadd.s32 1, %s1562_s15 }
  0x1a   : > { %s32_s19 = ssub.s32 %s1566_s16, %s1693_s28  ;;  %p42_p7 = scmp.ne.s32.totalorder %s1562_s15, %s1558_s14 }
  0x1b   : > { %p33_p8 = scmp.eq.s32.totalorder %s32_s19, 0  ;;  %p43_p9 = scmp.eq.s32.totalorder %s1566_s16, 0 }
  0x1c   : > { %p48_p10 = scmp.ne.s32.totalorder %s1558_s14, %s1554_s13  ;;  %p266_p11 = scmp.eq.s32.totalorder %s1661_s20, 1 }
  0x1d   : > { %s1705_s23 = scalar_select %p33_p8, %s1562_s15, %s35_s29  }
  0x1e   : > { %p1709_p12 = por %p49_p1, %p48_p10  ;;  %p1713_p13 = por %p266_p11, %p42_p7 }
  0x1f   : > { %1957 = sst [smem:[#allocation18_spill]] %s1705_s23  ;;  %p272_p0 = scmp.eq.s32.totalorder %s1245_s25, 1 }
  0x20   : > { %p44_p2 = por %p43_p9, %p42_p7  ;;  %s347_s30 = sand.u32 1, %s1562_s15  }
  0x21   : > { %p1718_p4 = por %p272_p0, %p48_p10  ;;  %p1319_p6 = scmp.lt.s32.totalorder %s1566_s16, 2 }
  0x22   : > { %s1251_s12 = sshll.u32 %s347_s30, 1  ;;  %s1252_s17 = sshll.u32 %s1566_s16, 1 }
  0x23   : > { %s355_s24 = scalar_lea.hbm %s1938_s0, %s1252_s17  ;;  %s351_s19 = scalar_lea.vmem [#allocation5], %s1251_s12 }
  0x24   : > { %s357_s29 = sshll.u32 %s355_s24, 4  ;;  %s359_s2 = sshll.u32 %s351_s19, 4  ;;  %s358_s29 = int_to_ptr.hbm [resolvable:$true] %s357_s29  ;;  %s360_s2 = int_to_ptr.vmem [resolvable:$true] %s359_s2 }
  0x25   : > { %p1727_p8 = pnand %p1319_p6, %p44_p2  ;;  %s348_s3 = scalar_lea.sflag [#allocation6], %s347_s30 }
  0x26   : > { %s1462_s8 = sshra.s32 %s358_s29, 4  ;;  %s1469_s12 = scalar_lea.hbm %s1938_s0, 4  ;;  %s1463_s8 = int_to_ptr.hbm [resolvable:$true] %s1462_s8 }
  0x27   : > { %s1464_s23 = scalar_lea.hbm %s1463_s8, 2  ;;  %p1466_p9 = pneg %p1727_p8 }
  0x28   : > { %p1465_p7 = scmp.ne.s32.totalorder %s1463_s8, %s1464_s23  ;;  %p1470_p0 = scmp.lt.s32.totalorder %s1463_s8, %s1938_s0 }
  0x29   : > { %p1471_p2 = scmp.lt.s32.totalorder %s1469_s12, %s1464_s23 }
  0x2a   : > { %p1467_p10 = pnand %p1466_p9, %p1465_p7 }
  0x2b   : > { %p1472_p6 = por %p1471_p2, %p1470_p0 }
  0x2c   : > { %p1468_p11 = pneg %p1467_p10 }
  0x2e   : > { %p1473_p5 = pnand %p1472_p6, %p1468_p11 }
  0x30   : > { %1476 = shalt.err (!%p1473_p5)
}
  0x31   : > { %1311 = dma.hbm_to_vmem [thread:$0]  (!%p1727_p8), %s358_s29, 32, %s360_s2, %s348_s3  }
  0x32   : > { %376 = sbr.rel (%p1666_p3) target bundleno = 879 (0x36f), region = 60  ;;  %s1744_s30 = sand.u32 (!%p1666_p3), 1, %s1558_s14  }
  0x33   : > { %s1254_s19 = sshll.u32 (!%p1666_p3), %s1744_s30, 1  ;;  %s379_s17 = scalar_lea.sflag (!%p1666_p3), [#allocation6], %s1744_s30 }
  0x34   : > { %s1748_s18 = scalar_lea.vmem (!%p1666_p3), [#allocation5], %s1254_s19 }
  0x37   : > { %1537 = dma.done.wait (%p1709_p12), %s379_s17, 32  }
  0x38   : > { %1539 = vsyncadd (%p1709_p12), %s379_s17, 4294967264 }
  0x39   : > { %1541 = dma.done.wait (%p49_p1), [#allocation9], 2560  }
  0x3a   : > { %1543 = vsyncadd (%p49_p1), [#allocation9], 4294964736 }
  0x3b   : > { %1545 = dma.done.wait (%p49_p1), [#allocation12], 64  }
  0x3c   : > { %1547 = vsyncadd (%p49_p1), [#allocation12], 4294967232  ;;  %v467_v0 = vld [vmem:[#allocation8 + $0x78] sm:$0xff]  ;;  %v466_v1 = vld [vmem:[#allocation8 + $0x70] sm:$0xff]  ;;  %vm468_vm0 = vcmask 523264   ;;  %p440_p1 = scmp.lt.s32.totalorder %s1661_s20, 1  ;;  %v531_v49 = vlaneseq }
  0x3d   : > { %v465_v2 = vld [vmem:[#allocation8 + $0x68] sm:$0xff]  ;;  %500 = vmatpush.msra.mxu1 %v467_v0  ;;  %480 = vmatpush.msra.mxu0 %v466_v1  ;;  %v464_v3 = vld [vmem:[#allocation8 + $0x60] sm:$0xff]  ;;  %v463_v4 = vld [vmem:[#allocation8 + $0x58] sm:$0xff]  ;;  %vm515_vm1 = vcmask 1043456   ;;  %s1573_s26 = smov 16   ;;  %s1574_s29 = smov 15  }
  0x3e   : > { %v462_v5 = vld [vmem:[#allocation8 + $0x50] sm:$0xff]  ;;  %v461_v6 = vld [vmem:[#allocation8 + $0x48] sm:$0xff]  ;;  %v460_v7 = vld [vmem:[#allocation8 + $0x40] sm:$0xff]  ;;  %s441_s2 = scalar_select %p440_p1, %s1661_s20, 1  ;;  %v1786_v51 = vand.u32 127, %v531_v49  ;;  %vm765_vm10 = vcmask 293888  }
  0x3f   : > { %501 = vmatpush.msra.mxu1 %v465_v2  ;;  %481 = vmatpush.msra.mxu0 %v464_v3  ;;  %v459_v8 = vld [vmem:[#allocation8 + $0x38] sm:$0xff]  ;;  %v458_v9 = vld [vmem:[#allocation8 + $0x30] sm:$0xff]  ;;  %v457_v10 = vld [vmem:[#allocation8 + $0x28] sm:$0xff]  ;;  %s1575_s25 = smov 1   ;;  %s1576_s12 = smov 127   ;;  %vm1008_vm11 = vcmask 1041408  }
  0x40   : > { %v456_v11 = vld [vmem:[#allocation8 + $0x20] sm:$0xff]  ;;  %v455_v12 = vld [vmem:[#allocation8 + $0x18] sm:$0xff]  ;;  %v454_v13 = vld [vmem:[#allocation8 + $0x10] sm:$0xff]  ;;  %s1280_s3 = sshll.u32 %s441_s2, 2  ;;  %s1577_s22 = smov 113   ;;  %vm555_vm2 = vcmp.lt.s32.totalorder %v1786_v51, 16 }
  0x41   : > { %502 = vmatpush.msra.mxu1 %v463_v4  ;;  %482 = vmatpush.msra.mxu0 %v462_v5  ;;  %v453_v14 = vld [vmem:[#allocation8 + $0x8] sm:$0xff]  ;;  %v452_v15 = vld [vmem:[#allocation8] sm:$0xff]  ;;  %v451_v16 = vld [vmem:[%s1748_s18] sm:$0x3]  ;;  %s444_s23 = scalar_lea.vmem %s1939_s1, %s1280_s3  ;;  %s1578_s24 = smov 17   ;;  %vm607_vm3 = vcmp.lt.s32.totalorder %v1786_v51, 1 }
  0x42   : > { %v445_v17 = vld [vmem:[%s444_s23] sm:$0xf]  ;;  %s1579_s19 = smov 112   ;;  %s1580_s17 = smov 111   ;;  %vm653_vm4 = vcmp.lt.s32.totalorder %v1786_v51, 127  ;;  %vm682_vm5 = vcmp.lt.s32.totalorder %v1786_v51, 113 }
  0x43   : > { %503 = vmatpush.msra.mxu1 %v461_v6  ;;  %483 = vmatpush.msra.mxu0 %v460_v7  ;;  %447 = vst [vmem:[#allocation1] ss:$2 sm:$0xff] %v445_v17  ;;  %v628_v27 = vld [vmem:[#allocation10 + $0x4] ss:$8 sm:$0x3]  ;;  %vm705_vm6 = vcmp.lt.s32.totalorder %v1786_v51, 112 }
  0x44   : > { %v631_v30 = vperm.slane %v628_v27, 1  ;;  %v630_v31 = vperm.slane %v628_v27, 0  ;;  %v559_v52 = vld [vmem:[#allocation10 + $0x1] ss:$8 sm:$0x3]  ;;  %vm734_vm7 = vcmp.lt.s32.totalorder %v1786_v51, 111 }
  0x45   : > { %504 = vmatpush.msra.mxu1 %v459_v8  ;;  %484 = vmatpush.msra.mxu0 %v458_v9  ;;  %v561_v53 = vperm.slane %v559_v52, 0  ;;  %v562_v54 = vperm.slane %v559_v52, 1  ;;  %v611_v1 = vld [vmem:[#allocation10 + $0x3] ss:$8 sm:$0x3]  ;;  %vm533_vm8 = vcmp.lt.s32.totalorder %v1786_v51, 17 }
  0x46   : > { %v632_v32 = vrot.slane %v631_v30, 4  ;;  %v657_v2 = vld [vmem:[#allocation10 + $0x5] ss:$8 sm:$0x3]  ;;  %v613_v3 = vperm.slane %v611_v1, 0  ;;  %v614_v4 = vperm.slane %v611_v1, 1 }
  0x47   : > { %505 = vmatpush.msra.mxu1 %v457_v10  ;;  %485 = vmatpush.msra.mxu0 %v456_v11  ;;  %v659_v6 = vperm.slane %v657_v2, 0  ;;  %v660_v7 = vperm.slane %v657_v2, 1  ;;  %vm584_vm9 = vcmp.lt.s32.totalorder %v1786_v51, 15  ;;  %vm1004_vm12 = vcmask 146432  }
  0x48   : > { %v633_v35 = vsel %vm515_vm1, %v630_v31, %v632_v32  ;;  %v709_v31 = vld [vmem:[#allocation10 + $0x7] ss:$8 sm:$0x3] }
  0x49   : > { %506 = vmatpush.msra.mxu1 %v455_v12  ;;  %486 = vmatpush.msra.mxu0 %v454_v13  ;;  %v711_v32 = vperm.slane %v709_v31, 0 }
  0x4a   : > { %v448_v18 = vld.sshfl [vmem:[#allocation1] sm:$0xff pattern:$0x75643120] }
  0x4b   : > { %507 = vmatpush.msra.mxu1 %v453_v14  ;;  %487 = vmatpush.msra.mxu0 %v452_v15  ;;  %450 = vst [vmem:[#allocation2] sm:$0x33] %v448_v18 }
  0x4c   : > { %1262 = vmatmul.msk.f32.vlgmr.msra.gmra.mxu1 %vm468_vm0, %v451_v16  ;;  %1261 = vmatmul.msk.f32.vlgmr.msra.gmra.mxu0 %vm468_vm0, %v451_v16 }
  0xc9   : > { %v509_v19 = vpop.f32.mrf.mxu1  ;;  %v489_v20 = vpop.f32.mrf.mxu0 }
  0xca   : > { %v514_v21 = vrot.slane %v509_v19, 4 }
  0xcc   : > { %v516_v22 = vsel %vm515_vm1, %v489_v20, %v514_v21  ;;  %v686_v21 = vld [vmem:[#allocation10 + $0x6] ss:$8 sm:$0x3] }
  0xcd   : > { %v517_v23 = vrot.slane %v516_v22, 6  ;;  %v688_v22 = vperm.slane %v686_v21, 0 }
  0xcf   : > { %519 = vst [vmem:[#allocation2] sm:$0xcc] %v517_v23  ;;  %v689_v23 = vperm.slane %v686_v21, 1 }
  0xd6   : > { %v520_v24 = vld [vmem:[#allocation2] sm:$0xff] }
  0xd7   : > { %522 = vst [vmem:[#allocation1] ss:$2 sm:$0xff] %v520_v24  ;;  %v635_v36 = vmul.f32 %v633_v35, %v520_v24  ;;  %v759_v35 = vld [vmem:[%s1943_s5] sm:$0x3] }
  0xde   : > { %v523_v25 = vld.sshfl [vmem:[#allocation1] sm:$0xff pattern:$0x75316420]  ;;  %v524_v26 = vld.sshfl [vmem:[#allocation1 + $0x8] sm:$0xff pattern:$0x75316420] }
  0xdf   : > { %546 = vst [vmem:[#allocation1] ss:$2 sm:$0xff] %v520_v24 }
  0xe6   : > { %v548_v28 = vld.sshfl [vmem:[#allocation1 + $0x8] sm:$0xff pattern:$0x75316420]  ;;  %v547_v29 = vld.sshfl [vmem:[#allocation1] sm:$0xff pattern:$0x75316420] }
  0xe7   : > { %553 = vrot.lane.b32.xlu2 %v548_v28, %s1573_s26  ;;  %551 = vrot.lane.b32.xlu1 %v547_v29, %s1573_s26  ;;  %575 = vst [vmem:[#allocation1] ss:$2 sm:$0xff] %v520_v24 }
  0xee   : > { %v576_v33 = vld.sshfl [vmem:[#allocation1] sm:$0xff pattern:$0x75316420]  ;;  %v577_v34 = vld.sshfl [vmem:[#allocation1 + $0x8] sm:$0xff pattern:$0x75316420] }
  0xef   : > { %580 = vrot.lane.b32.xlu0 %v576_v33, %s1574_s29  ;;  %598 = vst [vmem:[#allocation1] ss:$2 sm:$0xff] %v520_v24  ;;  %v712_v33 = vperm.slane %v709_v31, 1 }
  0xf6   : > { %v600_v37 = vld.sshfl [vmem:[#allocation1 + $0x8] sm:$0xff pattern:$0x75316420]  ;;  %v599_v38 = vld.sshfl [vmem:[#allocation1] sm:$0xff pattern:$0x75316420] }
  0xf7   : > { %605 = vrot.lane.b32.xlu0 %v600_v37, %s1575_s25  ;;  %603 = vrot.lane.b32.xlu2 %v599_v38, %s1575_s25  ;;  %637 = vst [vmem:[#allocation1] ss:$2 sm:$0xff] %v635_v36  ;;  %v1581_v37 = vmov 0  }
  0xf8   : > { %1370 = vset.pattern.permute.xlu1 %v1581_v37  ;;  %1371 = vset.pattern.permute.xlu0 %v1581_v37 }
  0xfe   : > { %v638_v39 = vld.sshfl [vmem:[#allocation1] sm:$0xff pattern:$0x75316420]  ;;  %v639_v40 = vld.sshfl [vmem:[#allocation1 + $0x8] sm:$0xff pattern:$0x75316420] }
  0xff   : > { %642 = vst [vmem:[#allocation3 + $0x48] sm:$0xf] %v638_v39 }
 0x100   : > { %643 = vst [vmem:[#allocation3 + $0x28] sm:$0xf] %v639_v40 }
 0x101   : > { %644 = vst [vmem:[#allocation1] ss:$2 sm:$0xff] %v520_v24 }
 0x108   : > { %v645_v41 = vld.sshfl [vmem:[#allocation1] sm:$0xff pattern:$0x75316420]  ;;  %v646_v42 = vld.sshfl [vmem:[#allocation1 + $0x8] sm:$0xff pattern:$0x75316420] }
 0x109   : > { %649 = vrot.lane.b32.xlu2 %v645_v41, %s1576_s12  ;;  %673 = vst [vmem:[#allocation1] ss:$2 sm:$0xff] %v520_v24 }
 0x110   : > { %v675_v43 = vld.sshfl [vmem:[#allocation1 + $0x8] sm:$0xff pattern:$0x75316420]  ;;  %v674_v44 = vld.sshfl [vmem:[#allocation1] sm:$0xff pattern:$0x75316420] }
 0x111   : > { %651 = vrot.lane.b32.xlu2 %v646_v42, %s1576_s12  ;;  %680 = vrot.lane.b32.xlu1 %v675_v43, %s1577_s22  ;;  %696 = vst [vmem:[#allocation1] ss:$2 sm:$0xff] %v520_v24  ;;  %v738_v42 = vld [vmem:[#allocation10 + $0x10] ss:$8 sm:$0x3] }
 0x112   : > { %678 = vrot.lane.b32.xlu0 %v674_v44, %s1577_s22  ;;  %v536_v43 = vld [vmem:[#allocation10] ss:$8 sm:$0x3]  ;;  %v741_v49 = vperm.slane %v738_v42, 1 }
 0x118   : > { %v697_v45 = vld.sshfl [vmem:[#allocation1] sm:$0xff pattern:$0x75316420]  ;;  %v698_v46 = vld.sshfl [vmem:[#allocation1 + $0x8] sm:$0xff pattern:$0x75316420] }
 0x119   : > { %527 = vrot.lane.b32.xlu2 %v523_v25, %s1578_s24  ;;  %725 = vst [vmem:[#allocation1] ss:$2 sm:$0xff] %v520_v24 }
 0x11a   : > { %701 = vrot.lane.b32.xlu0 %v697_v45, %s1579_s19 }
 0x120   : > { %v726_v47 = vld.sshfl [vmem:[#allocation1] sm:$0xff pattern:$0x75316420]  ;;  %v727_v48 = vld.sshfl [vmem:[#allocation1 + $0x8] sm:$0xff pattern:$0x75316420] }
 0x121   : > { %730 = vrot.lane.b32.xlu1 %v726_v47, %s1580_s17  ;;  %v538_v47 = vperm.slane %v536_v43, 0 }
 0x122   : > { %703 = vrot.lane.b32.xlu0 %v698_v46, %s1579_s19  ;;  %v740_v46 = vperm.slane %v738_v42, 0 }
 0x129   : > { %732 = vrot.lane.b32.xlu1 %v727_v48, %s1580_s17  ;;  %v539_v48 = vperm.slane %v536_v43, 1 }
 0x12a   : > { %529 = vrot.lane.b32.xlu0 %v524_v26, %s1578_s24 }
 0x131   : > { %582 = vrot.lane.b32.xlu1 %v577_v34, %s1574_s29 }
 0x139   : > { %762 = vperm.xlu1 %1370, %v759_v35  }
 0x141   : > { %v554_v50 = vpop.permute.xlu2 %553 }
 0x151   : > { %v604_v58 = vpop.permute.xlu2 %603 }
 0x159   : > { %v552_v55 = vpop.permute.xlu1 %551 }
 0x15a   : > { %v556_v56 = vsel %vm555_vm2, %v552_v55, %v554_v50  ;;  %v557_v57 = vsel %vm555_vm2, %v554_v50, %v552_v55 }
 0x15b   : > { %v565_v59 = vmul.f32 %v561_v53, %v557_v57  ;;  %v566_v60 = vmul.f32 %v562_v54, %v556_v56 }
 0x15d   : > { %v569_v61 = vrot.slane %v565_v59, 4  ;;  %v570_v62 = vrot.slane %v566_v60, 4 }
 0x15f   : > { %573 = vst [vmem:[#allocation3 + $0x30] sm:$0xf0] %v569_v61 }
 0x160   : > { %574 = vst [vmem:[#allocation3] sm:$0xf0] %v570_v62  ;;  %v588_v62 = vld [vmem:[#allocation10 + $0x2] ss:$8 sm:$0x3] }
 0x161   : > { %v1793_v63 = vpop.permute.xlu0 %580  ;;  %v591_v1 = vperm.slane %v588_v62, 1 }
 0x163   : > { %v650_v0 = vpop.permute.xlu2 %649 }
 0x169   : > { %v606_v5 = vpop.permute.xlu0 %605 }
 0x16a   : > { %v608_v8 = vsel %vm607_vm3, %v604_v58, %v606_v5  ;;  %v609_v9 = vsel %vm607_vm3, %v606_v5, %v604_v58 }
 0x16b   : > { %v617_v10 = vmul.f32 %v613_v3, %v609_v9  ;;  %v618_v11 = vmul.f32 %v614_v4, %v608_v8  ;;  %v652_v12 = vpop.permute.xlu2 %651 }
 0x16c   : > { %v654_v13 = vsel %vm653_vm4, %v650_v0, %v652_v12  ;;  %v655_v14 = vsel %vm653_vm4, %v652_v12, %v650_v0  ;;  %v590_v0 = vperm.slane %v588_v62, 0 }
 0x16d   : > { %v621_v15 = vrot.slane %v617_v10, 4  ;;  %v622_v16 = vrot.slane %v618_v11, 4  ;;  %v663_v17 = vmul.f32 %v659_v6, %v654_v13  ;;  %v664_v18 = vmul.f32 %v660_v7, %v655_v14 }
 0x16f   : > { %625 = vst [vmem:[#allocation3 + $0x18] sm:$0xf0] %v621_v15  ;;  %v667_v19 = vrot.slane %v663_v17, 4  ;;  %v668_v20 = vrot.slane %v664_v18, 4  ;;  %v758_v15 = vld [vmem:[%s1942_s4] sm:$0x3] }
 0x170   : > { %626 = vst [vmem:[#allocation3 + $0x10] sm:$0xf0] %v622_v16  ;;  %v899_v18 = vld [vmem:[#allocation10 + $0x4] ss:$8 sm:$0x3] }
 0x171   : > { %671 = vst [vmem:[#allocation3 + $0x48] sm:$0xf0] %v667_v19 }
 0x172   : > { %672 = vst [vmem:[#allocation3 + $0x28] sm:$0xf0] %v668_v20 }
 0x173   : > { %v528_v52 = vpop.permute.xlu2 %527 }
 0x178   : > { %v752_v10 = vld [vmem:[#allocation3 + $0x48] sm:$0xff] }
 0x183   : > { %v681_v24 = vpop.permute.xlu1 %680 }
 0x184   : > { %v679_v25 = vpop.permute.xlu0 %678 }
 0x185   : > { %v683_v26 = vsel %vm682_vm5, %v679_v25, %v681_v24  ;;  %v684_v27 = vsel %vm682_vm5, %v681_v24, %v679_v25  ;;  %v902_v24 = vperm.slane %v899_v18, 1 }
 0x186   : > { %v692_v28 = vmul.f32 %v688_v22, %v683_v26  ;;  %v693_v29 = vmul.f32 %v689_v23, %v684_v27  ;;  %v901_v23 = vperm.slane %v899_v18, 0 }
 0x188   : > { %694 = vst [vmem:[#allocation3 + $0x8] sm:$0xf] %v692_v28 }
 0x189   : > { %695 = vst [vmem:[#allocation3 + $0x20] sm:$0xf] %v693_v29  ;;  %v1101_v29 = vld [vmem:[%s1947_s9] sm:$0xf] }
 0x18c   : > { %v702_v30 = vpop.permute.xlu0 %701 }
 0x193   : > { %v731_v34 = vpop.permute.xlu1 %730 }
 0x194   : > { %v704_v36 = vpop.permute.xlu0 %703 }
 0x195   : > { %v706_v38 = vsel %vm705_vm6, %v702_v30, %v704_v36  ;;  %v707_v39 = vsel %vm705_vm6, %v704_v36, %v702_v30 }
 0x196   : > { %v715_v40 = vmul.f32 %v711_v32, %v706_v38  ;;  %v716_v41 = vmul.f32 %v712_v33, %v707_v39  ;;  %v915_v32 = vld [vmem:[#allocation10 + $0x5] ss:$8 sm:$0x3]  ;;  %v937_v33 = vld [vmem:[#allocation10 + $0x6] ss:$8 sm:$0x3] }
 0x197   : > { %v918_v35 = vperm.slane %v915_v32, 1  ;;  %v939_v36 = vperm.slane %v937_v33, 0  ;;  %v940_v37 = vperm.slane %v937_v33, 1 }
 0x198   : > { %v719_v44 = vrot.slane %v715_v40, 4  ;;  %v720_v45 = vrot.slane %v716_v41, 4 }
 0x19a   : > { %723 = vst [vmem:[#allocation3 + $0x8] sm:$0xf0] %v719_v44 }
 0x19b   : > { %724 = vst [vmem:[#allocation3 + $0x20] sm:$0xf0] %v720_v45  ;;  %v733_v50 = vpop.permute.xlu1 %732 }
 0x19c   : > { %v530_v53 = vpop.permute.xlu0 %529  ;;  %v735_v54 = vsel %vm734_vm7, %v731_v34, %v733_v50  ;;  %v736_v55 = vsel %vm734_vm7, %v733_v50, %v731_v34  ;;  %v917_v34 = vperm.slane %v915_v32, 0  ;;  %v883_v32 = vld [vmem:[#allocation10 + $0x3] ss:$8 sm:$0x3] }
 0x19d   : > { %v534_v56 = vsel %vm533_vm8, %v528_v52, %v530_v53  ;;  %v535_v57 = vsel %vm533_vm8, %v530_v53, %v528_v52  ;;  %v744_v58 = vmul.f32 %v740_v46, %v735_v54  ;;  %v745_v61 = vmul.f32 %v741_v49, %v736_v55  ;;  %v959_v49 = vld [vmem:[#allocation10 + $0x7] ss:$8 sm:$0x3] }
 0x19e   : > { %v542_v59 = vmul.f32 %v538_v47, %v535_v57  ;;  %v543_v60 = vmul.f32 %v539_v48, %v534_v56  ;;  %v961_v55 = vperm.slane %v959_v49, 0  ;;  %v962_v56 = vperm.slane %v959_v49, 1 }
 0x19f   : > { %746 = vst [vmem:[#allocation3 + $0x40] sm:$0xf] %v744_v58 }
 0x1a0   : > { %544 = vst [vmem:[#allocation3 + $0x30] sm:$0xf] %v542_v59 }
 0x1a1   : > { %545 = vst [vmem:[#allocation3] sm:$0xf] %v543_v60  ;;  %v754_v8 = vld [vmem:[#allocation3 + $0x8] sm:$0xff] }
 0x1a2   : > { %747 = vst [vmem:[#allocation3 + $0x38] sm:$0xf] %v745_v61  ;;  %v755_v11 = vld [vmem:[#allocation3 + $0x20] sm:$0xff] }
 0x1a3   : > { %v583_v2 = vpop.permute.xlu1 %582 }
 0x1a4   : > { %v585_v3 = vsel %vm584_vm9, %v1793_v63, %v583_v2  ;;  %v586_v4 = vsel %vm584_vm9, %v583_v2, %v1793_v63  ;;  %v753_v63 = vld [vmem:[#allocation3 + $0x28] sm:$0xff] }
 0x1a5   : > { %v594_v5 = vmul.f32 %v590_v0, %v586_v4  ;;  %v595_v6 = vmul.f32 %v591_v1, %v585_v3  ;;  %v981_v1 = vld [vmem:[#allocation10 + $0x10] ss:$8 sm:$0x3]  ;;  %v839_v2 = vld [vmem:[#allocation10 + $0x1] ss:$8 sm:$0x3] }
 0x1a6   : > { %v756_v7 = vld [vmem:[#allocation3 + $0x40] sm:$0xf] }
 0x1a7   : > { %596 = vst [vmem:[#allocation3 + $0x18] sm:$0xf] %v594_v5  ;;  %1263 = vmatpush.msk.msra.mxu2 %vm515_vm1, %v756_v7  ;;  %1271 = vmatpush.msk.msrb.mxu0 %vm515_vm1, %v756_v7  ;;  %v748_v14 = vld [vmem:[#allocation3 + $0x30] sm:$0xff]  ;;  %v983_v5 = vperm.slane %v981_v1, 0  ;;  %v841_v7 = vperm.slane %v839_v2, 0 }
 0x1a8   : > { %597 = vst [vmem:[#allocation3 + $0x10] sm:$0xf] %v595_v6  ;;  %v749_v16 = vld [vmem:[#allocation3] sm:$0xff]  ;;  %v984_v6 = vperm.slane %v981_v1, 1 }
 0x1a9   : > { %v757_v9 = vld [vmem:[#allocation3 + $0x38] sm:$0xf]  ;;  %787 = vmatpush.msra.mxu2 %v754_v8  ;;  %1071 = vmatpush.msrb.mxu0 %v754_v8  ;;  %v842_v8 = vperm.slane %v839_v2, 1 }
 0x1aa   : > { %1265 = vmatpush.msk.msra.mxu3 %vm515_vm1, %v757_v9  ;;  %1273 = vmatpush.msk.msrb.mxu1 %vm515_vm1, %v757_v9 }
 0x1ab   : > { %788 = vmatpush.msra.mxu2 %v752_v10  ;;  %1072 = vmatpush.msrb.mxu0 %v752_v10  ;;  %v763_v17 = vpop.permute.xlu1 %762 }
 0x1ac   : > { %807 = vmatpush.msra.mxu3 %v755_v11  ;;  %1091 = vmatpush.msrb.mxu1 %v755_v11  ;;  %v1055_v11 = vld [vmem:[#allocation11] sm:$0xf] }
 0x1ae   : > { %808 = vmatpush.msra.mxu3 %v753_v63  ;;  %1092 = vmatpush.msrb.mxu1 %v753_v63  ;;  %v750_v12 = vld [vmem:[#allocation3 + $0x18] sm:$0xff]  ;;  %v998_v63 = vld [vmem:[%s1945_s7] sm:$0xf] }
 0x1af   : > { %789 = vmatpush.msra.mxu2 %v750_v12  ;;  %v751_v13 = vld [vmem:[#allocation3 + $0x10] sm:$0xff]  ;;  %1073 = vmatpush.msrb.mxu0 %v750_v12 }
 0x1b0   : > { %809 = vmatpush.msra.mxu3 %v751_v13  ;;  %1093 = vmatpush.msrb.mxu1 %v751_v13 }
 0x1b1   : > { %790 = vmatpush.msra.mxu2 %v748_v14  ;;  %1074 = vmatpush.msrb.mxu0 %v748_v14 }
 0x1b2   : > { %810 = vmatpush.msra.mxu3 %v749_v16  ;;  %1094 = vmatpush.msrb.mxu1 %v749_v16 }
 0x1b3   : > { %1264 = vmatmul.msk.f32.vlgmr.msra.gmra.mxu2 %vm765_vm10, %v758_v15  ;;  %1266 = vmatmul.msk.f32.vlgmr.msra.gmra.mxu3 %vm765_vm10, %v758_v15 }
 0x1b4   : > { %1272 = vmatmul.msk.f32.vlgmr.msrb.gmra.mxu0 %vm765_vm10, %v1055_v11  ;;  %1274 = vmatmul.msk.f32.vlgmr.msrb.gmra.mxu1 %vm765_vm10, %v1055_v11 }
 0x231   : > { %v1096_v2 = vpop.f32.mrf.mxu1 }
 0x236   : > { %v812_v19 = vpop.f32.mrf.mxu3  ;;  %v792_v20 = vpop.f32.mrf.mxu2 }
 0x237   : > { %v813_v21 = vadd.f32 %v812_v19, %v763_v17  ;;  %v793_v22 = vadd.f32 %v792_v20, %v763_v17  ;;  %v861_v20 = vld [vmem:[#allocation10 + $0x2] ss:$8 sm:$0x3] }
 0x239   : > { %v816_v25 = vmax.f32 %v813_v21, 0.0  ;;  %v815_v26 = vmax.f32 %v793_v22, 0.0 }
 0x23b   : > { %911 = vrot.lane.b32.xlu0 %v816_v25, %s1576_s12  ;;  %931 = vrot.lane.b32.xlu1 %v815_v26, %s1577_s22  ;;  %v905_v27 = vmul.f32 %v901_v23, %v815_v26  ;;  %v906_v28 = vmul.f32 %v902_v24, %v816_v25  ;;  %v863_v24 = vperm.slane %v861_v20, 0 }
 0x23c   : > { %909 = vrot.lane.b32.xlu2 %v815_v26, %s1576_s12 }
 0x23d   : > { %907 = vst [vmem:[#allocation4] sm:$0x3] %v905_v27 }
 0x23e   : > { %908 = vst [vmem:[#allocation4 + $0x18] sm:$0x3] %v906_v28 }
 0x243   : > { %953 = vrot.lane.b32.xlu0 %v815_v26, %s1579_s19  ;;  %955 = vrot.lane.b32.xlu1 %v816_v25, %s1579_s19 }
 0x244   : > { %933 = vrot.lane.b32.xlu2 %v816_v25, %s1577_s22  ;;  %s1258_s22 = sshll.u32 %s1744_s30, 3 }
 0x245   : > { %s439_s2 = scalar_lea.vmem [#allocation13], %s1258_s22 }
 0x246   : > { %s1131_s3 = sshll.u32 %s439_s2, 4  ;;  %s1132_s3 = int_to_ptr.vmem [resolvable:$true] %s1131_s3 }
 0x24b   : > { %977 = vrot.lane.b32.xlu0 %v816_v25, %s1580_s17  ;;  %833 = vrot.lane.b32.xlu1 %v815_v26, %s1573_s26 }
 0x24c   : > { %975 = vrot.lane.b32.xlu2 %v815_v26, %s1580_s17 }
 0x253   : > { %855 = vrot.lane.b32.xlu0 %v815_v26, %s1574_s29  ;;  %857 = vrot.lane.b32.xlu1 %v816_v25, %s1574_s29 }
 0x254   : > { %835 = vrot.lane.b32.xlu2 %v816_v25, %s1573_s26 }
 0x25b   : > { %879 = vrot.lane.b32.xlu0 %v816_v25, %s1575_s25  ;;  %817 = vrot.lane.b32.xlu1 %v815_v26, %s1578_s24 }
 0x25c   : > { %877 = vrot.lane.b32.xlu2 %v815_v26, %s1575_s25  ;;  %s1512_s25 = scalar_lea.hbm %s1948_s10, 16 }
 0x263   : > { %1104 = vperm.xlu1 %1370, %v1101_v29   ;;  %1001 = vperm.xlu0 %1371, %v998_v63  }
 0x264   : > { %819 = vrot.lane.b32.xlu2 %v816_v25, %s1578_s24  ;;  %v864_v25 = vperm.slane %v861_v20, 1  ;;  %s1281_s24 = sshll.u32 %s1661_s20, 3  ;;  %s1118_s20 = scalar_lea.sflag [#allocation7], %s1744_s30 }
 0x265   : > { %s1129_s18 = scalar_lea.hbm %s1948_s10, %s1281_s24 }
 0x266   : > { %s1133_s8 = sshll.u32 %s1129_s18, 4  ;;  %s1134_s8 = int_to_ptr.hbm [resolvable:$true] %s1133_s8 }
 0x267   : > { %s1506_s21 = sshra.s32 %s1134_s8, 4  ;;  %s1507_s21 = int_to_ptr.hbm [resolvable:$true] %s1506_s21 }
 0x268   : > { %s1508_s23 = scalar_lea.hbm %s1507_s21, 8  ;;  %p1513_p8 = scmp.lt.s32.totalorder %s1507_s21, %s1948_s10 }
 0x269   : > { %p1509_p3 = scmp.ne.s32.totalorder %s1507_s21, %s1508_s23  ;;  %p1514_p7 = scmp.lt.s32.totalorder %s1512_s25, %s1508_s23 }
 0x26b   : > { %p1510_p5 = pnand %p1509_p3, %p1713_p13  ;;  %p1515_p9 = por %p1514_p7, %p1513_p8 }
 0x26d   : > { %p1511_p12 = pneg %p1510_p5 }
 0x26f   : > { %p1516_p10 = pnand %p1515_p9, %p1511_p12 }
 0x296   : > { %v910_v30 = vpop.permute.xlu2 %909 }
 0x29e   : > { %v934_v31 = vpop.permute.xlu2 %933 }
 0x2a6   : > { %v976_v40 = vpop.permute.xlu2 %975 }
 0x2ad   : > { %v912_v38 = vpop.permute.xlu0 %911  ;;  %v932_v39 = vpop.permute.xlu1 %931 }
 0x2ae   : > { %v913_v41 = vsel %vm653_vm4, %v910_v30, %v912_v38  ;;  %v914_v42 = vsel %vm653_vm4, %v912_v38, %v910_v30  ;;  %v935_v43 = vsel %vm682_vm5, %v932_v39, %v934_v31  ;;  %v936_v44 = vsel %vm682_vm5, %v934_v31, %v932_v39  ;;  %v836_v0 = vpop.permute.xlu2 %835 }
 0x2af   : > { %v921_v45 = vmul.f32 %v917_v34, %v913_v41  ;;  %v922_v46 = vmul.f32 %v918_v35, %v914_v42  ;;  %v943_v47 = vmul.f32 %v939_v36, %v935_v43  ;;  %v944_v48 = vmul.f32 %v940_v37, %v936_v44  ;;  %v823_v34 = vld [vmem:[#allocation10] ss:$8 sm:$0x3] }
 0x2b0   : > { %v885_v39 = vperm.slane %v883_v32, 0  ;;  %v886_v41 = vperm.slane %v883_v32, 1  ;;  %v825_v42 = vperm.slane %v823_v34, 0  ;;  %v826_v43 = vperm.slane %v823_v34, 1 }
 0x2b1   : > { %v925_v50 = vrot.slane %v921_v45, 6  ;;  %v926_v52 = vrot.slane %v922_v46, 6  ;;  %v947_v53 = vrot.slane %v943_v47, 4  ;;  %v948_v54 = vrot.slane %v944_v48, 4 }
 0x2b3   : > { %929 = vst [vmem:[#allocation4] sm:$0xc] %v925_v50 }
 0x2b4   : > { %930 = vst [vmem:[#allocation4 + $0x18] sm:$0xc] %v926_v52 }
 0x2b5   : > { %951 = vst [vmem:[#allocation4] sm:$0x30] %v947_v53  ;;  %v954_v57 = vpop.permute.xlu0 %953  ;;  %v956_v58 = vpop.permute.xlu1 %955 }
 0x2b6   : > { %952 = vst [vmem:[#allocation4 + $0x18] sm:$0x30] %v948_v54  ;;  %v957_v59 = vsel %vm705_vm6, %v954_v57, %v956_v58  ;;  %v958_v60 = vsel %vm705_vm6, %v956_v58, %v954_v57  ;;  %v878_v23 = vpop.permute.xlu2 %877  ;;  %v991_v58 = vld [vmem:[%s1944_s6] sm:$0xf] }
 0x2b7   : > { %v965_v61 = vmul.f32 %v961_v55, %v957_v59  ;;  %v966_v62 = vmul.f32 %v962_v56, %v958_v60 }
 0x2b9   : > { %v969_v3 = vrot.slane %v965_v61, 2  ;;  %v970_v4 = vrot.slane %v966_v62, 2  ;;  %v1076_v62 = vpop.f32.mrf.mxu0 }
 0x2bb   : > { %973 = vst [vmem:[#allocation4] sm:$0xc0] %v969_v3 }
 0x2bc   : > { %974 = vst [vmem:[#allocation4 + $0x18] sm:$0xc0] %v970_v4 }
 0x2bd   : > { %v978_v9 = vpop.permute.xlu0 %977  ;;  %v834_v10 = vpop.permute.xlu1 %833 }
 0x2be   : > { %v979_v12 = vsel %vm734_vm7, %v976_v40, %v978_v9  ;;  %v980_v13 = vsel %vm734_vm7, %v978_v9, %v976_v40  ;;  %v837_v14 = vsel %vm555_vm2, %v834_v10, %v836_v0  ;;  %v838_v15 = vsel %vm555_vm2, %v836_v0, %v834_v10  ;;  %v820_v44 = vpop.permute.xlu2 %819 }
 0x2bf   : > { %v987_v16 = vmul.f32 %v983_v5, %v979_v12  ;;  %v988_v17 = vmul.f32 %v984_v6, %v980_v13  ;;  %v845_v18 = vmul.f32 %v841_v7, %v838_v15  ;;  %v846_v19 = vmul.f32 %v842_v8, %v837_v14 }
 0x2c1   : > { %989 = vst [vmem:[#allocation4 + $0x28] sm:$0x3] %v987_v16  ;;  %v849_v21 = vrot.slane %v845_v18, 6  ;;  %v850_v22 = vrot.slane %v846_v19, 6 }
 0x2c2   : > { %990 = vst [vmem:[#allocation4 + $0x20] sm:$0x3] %v988_v17  ;;  %v994_v38 = vld [vmem:[#allocation4] sm:$0xff] }
 0x2c3   : > { %853 = vst [vmem:[#allocation4 + $0x8] sm:$0xc] %v849_v21  ;;  %v995_v40 = vld [vmem:[#allocation4 + $0x18] sm:$0xff] }
 0x2c4   : > { %854 = vst [vmem:[#allocation4 + $0x10] sm:$0xc] %v850_v22 }
 0x2c5   : > { %v856_v26 = vpop.permute.xlu0 %855  ;;  %v858_v27 = vpop.permute.xlu1 %857 }
 0x2c6   : > { %v859_v28 = vsel %vm584_vm9, %v856_v26, %v858_v27  ;;  %v860_v29 = vsel %vm584_vm9, %v858_v27, %v856_v26 }
 0x2c7   : > { %v867_v30 = vmul.f32 %v863_v24, %v860_v29  ;;  %v868_v31 = vmul.f32 %v864_v25, %v859_v28 }
 0x2c8   : > { %v996_v33 = vld [vmem:[#allocation4 + $0x28] sm:$0x3] }
 0x2c9   : > { %v871_v35 = vrot.slane %v867_v30, 4  ;;  %v872_v36 = vrot.slane %v868_v31, 4  ;;  %1267 = vmatpush.msk.msrb.mxu2 %vm1008_vm11, %v996_v33  ;;  %v997_v37 = vld [vmem:[#allocation4 + $0x20] sm:$0x3] }
 0x2ca   : > { %1269 = vmatpush.msk.msrb.mxu3 %vm1008_vm11, %v997_v37 }
 0x2cb   : > { %875 = vst [vmem:[#allocation4 + $0x8] sm:$0x30] %v871_v35  ;;  %1029 = vmatpush.msrb.mxu2 %v994_v38 }
 0x2cc   : > { %876 = vst [vmem:[#allocation4 + $0x10] sm:$0x30] %v872_v36  ;;  %1049 = vmatpush.msrb.mxu3 %v995_v40 }
 0x2cd   : > { %v880_v45 = vpop.permute.xlu0 %879  ;;  %v818_v46 = vpop.permute.xlu1 %817 }
 0x2ce   : > { %v881_v47 = vsel %vm607_vm3, %v878_v23, %v880_v45  ;;  %v882_v48 = vsel %vm607_vm3, %v880_v45, %v878_v23  ;;  %v821_v49 = vsel %vm533_vm8, %v818_v46, %v820_v44  ;;  %v822_v50 = vsel %vm533_vm8, %v820_v44, %v818_v46 }
 0x2cf   : > { %v889_v52 = vmul.f32 %v885_v39, %v882_v48  ;;  %v890_v53 = vmul.f32 %v886_v41, %v881_v47  ;;  %v829_v54 = vmul.f32 %v825_v42, %v822_v50  ;;  %v830_v55 = vmul.f32 %v826_v43, %v821_v49 }
 0x2d1   : > { %v893_v56 = vrot.slane %v889_v52, 2  ;;  %v894_v57 = vrot.slane %v890_v53, 2  ;;  %831 = vst [vmem:[#allocation4 + $0x8] sm:$0x3] %v829_v54 }
 0x2d2   : > { %832 = vst [vmem:[#allocation4 + $0x10] sm:$0x3] %v830_v55 }
 0x2d3   : > { %897 = vst [vmem:[#allocation4 + $0x8] sm:$0xc0] %v893_v56 }
 0x2d4   : > { %898 = vst [vmem:[#allocation4 + $0x10] sm:$0xc0] %v894_v57 }
 0x2d5   : > { %v1002_v60 = vpop.permute.xlu0 %1001  ;;  %v1105_v6 = vpop.permute.xlu1 %1104 }
 0x2da   : > { %v992_v59 = vld [vmem:[#allocation4 + $0x8] sm:$0xff] }
 0x2db   : > { %1030 = vmatpush.msrb.mxu2 %v992_v59  ;;  %v993_v51 = vld [vmem:[#allocation4 + $0x10] sm:$0xff] }
 0x2dc   : > { %1050 = vmatpush.msrb.mxu3 %v993_v51  ;;  %1268 = vmatmul.msk.f32.vlgmr.msrb.gmra.mxu2 %vm1004_vm12, %v991_v58 }
 0x2dd   : > { %1270 = vmatmul.msk.f32.vlgmr.msrb.gmra.mxu3 %vm1004_vm12, %v991_v58 }
 0x35f   : > { %v1032_v61 = vpop.f32.mrf.mxu2 }
 0x360   : > { %v1033_v0 = vadd.f32 %v1032_v61, %v1002_v60  ;;  %v1052_v1 = vpop.f32.mrf.mxu3 }
 0x361   : > { %v1053_v3 = vadd.f32 %v1052_v1, %v1002_v60 }
 0x362   : > { %v1099_v4 = vadd.f32 %v1076_v62, %v1033_v0 }
 0x363   : > { %v1100_v5 = vadd.f32 %v1096_v2, %v1053_v3 }
 0x364   : > { %v1107_v7 = vadd.f32 %v1105_v6, %v1099_v4 }
 0x365   : > { %v1108_v8 = vadd.f32 %v1105_v6, %v1100_v5 }
 0x366   : > { %v1109_v10 = vmax.f32 %v1107_v7, 0.0 }
 0x367   : > { %v1110_v9 = vmax.f32 %v1108_v8, 0.0 }
 0x369   : > { %v1113_v11 = vrot.slane %v1110_v9, 4 }
 0x36b   : > { %v1114_v63 = vsel %vm515_vm1, %v1109_v10, %v1113_v11 }
 0x36c   : > { %1116 = vst [vmem:[%s439_s2] sm:$0xff] %v1114_v63 }
 0x36d   : > { %1519 = shalt.err (!%p1516_p10)
}
 0x36e   : > { %1296 = dma.vmem_to_hbm [thread:$0]  (%p1713_p13), %s1132_s3, 128, %s1134_s8, %s1118_s20  }
 0x36f PF: > { %s1145_s30 = sand.u32 1, %s1554_s13   ;;  %p1962_p11 = scmp.ge.s32.totalorder %s1566_s16, 2 }
 0x370   : > { %s1146_s24 = scalar_lea.sflag [#allocation7], %s1145_s30 }
 0x371   : > { %p1313_p0 = pnand %p1962_p11, %p1718_p4 }
 0x373   : > { %p1314_p2 = pneg %p1313_p0 }
 0x375   : > { %1549 = dma.done.wait (%p1314_p2), %s1146_s24, 128  }
 0x376   : > { %1551 = vsyncadd (%p1314_p2), %s1146_s24, 4294967168  ;;  %s1963_s19 = sld [smem:[#allocation18_spill]]  ;;  %p25_p6 = scmp.ge.s32.totalorder %s1693_s28, 4  }
 0x377   : > { %s1964_s13 = smov %s1558_s14  ;;  %s1965_s14 = smov %s1562_s15 }
 0x378   : > { %s1967_s16 = smov %s1693_s28  ;;  %27 = sbr.rel (!%p25_p6) target bundleno = 11 (0xb), region = 128 }
 0x37c   : > { %s1966_s15 = smov %s1963_s19 }
 0x37d   :  { %1152 = vsyncpa [#allocation6], 1 }
 0x37e   :  { %1154 = vsyncpa [#allocation6 + $0x1], 1 }
 0x37f   :  { %1155 = vsyncpa [#allocation9], 1 }
 0x380   :  { %1156 = vsyncpa [#allocation12], 1 }
 0x381   :  { %1157 = vsyncpa [#allocation7], 1 }
 0x382   :  { %1159 = vsyncpa [#allocation7 + $0x1], 1 }

</bundles_post_ra>
